<compile_context>
chip_gen: v6e
topology: v6e:2x2x1
jax: 0.10.0
libtpu: 0.0.40
codegen_flags: <defaults>
</compile_context>

<pallas_src>
import jax
import jax.numpy as jnp
from jax import lax
from jax.experimental import pallas as pl
from jax.experimental.pallas import tpu as pltpu


def _setnorm_kernel(x_ref, w_ref, g_ref, b_ref, o_ref):
    # x_ref: (H, Bn, C)   input slab (native layout, any float dtype)
    # w_ref: (H, Bn, 1)   f32 per-hit weights = valid/count (0.0 for masked hits)
    # g_ref: (1, 1, C)    scale (weight)
    # b_ref: (1, 1, C)    shift (bias)
    # o_ref: (H, Bn, C)
    x = x_ref[...].astype(jnp.float32)                    # (H, Bn, C)
    w = w_ref[...]                                        # (H, Bn, 1), already f32
    inv_c = jnp.float32(1.0 / x.shape[-1])

    # Single sweep over x: weighted first and second moments.
    wx = x * w                                            # (H, Bn, C)
    # Reduce over H first (cheap VALU adds), then one XLU cross-lane reduce over C.
    sh1 = jnp.sum(wx, axis=0, keepdims=True)              # (1, Bn, C)
    sh2 = jnp.sum(wx * x, axis=0, keepdims=True)          # (1, Bn, C)
    mean = jnp.sum(sh1, axis=2, keepdims=True) * inv_c    # (1, Bn, 1)
    ex2 = jnp.sum(sh2, axis=2, keepdims=True) * inv_c     # (1, Bn, 1)
    # E_w[x^2] - mean^2; clamp guards tiny negative values from rounding.
    var = jnp.maximum(ex2 - mean * mean, jnp.float32(0.0))

    gamma = g_ref[...].astype(jnp.float32)                # (1, 1, C)
    beta = b_ref[...].astype(jnp.float32)                 # (1, 1, C)
    # rsqrt folded into gamma; mean folded into the shift -> out = x*scale + shift.
    scale = lax.rsqrt(var + jnp.float32(1e-5)) * gamma    # (1, Bn, C)
    shift = beta - mean * scale                           # (1, Bn, C)
    out = x * scale + shift                               # (H, Bn, C)

    # masked_fill_(mask, 0): masked hits have w == 0.  where() (not a multiply)
    # also keeps fully-masked batch elements at exactly 0.
    o_ref[...] = jnp.where(w > jnp.float32(0.0), out, jnp.float32(0.0)).astype(o_ref.dtype)


def _cdiv(a, b):
    return -(-a // b)


def _vmem_limit_bytes():
    """Generation-aware scoped-VMEM request (leave headroom for compiler scratch)."""
    cap = 128 * 1024 * 1024
    try:
        cap = pltpu.get_tpu_info().vmem_capacity_bytes
    except Exception:
        pass
    if cap <= 64 * 1024 * 1024:          # v7x: 64 MiB physical per TensorCore
        return 40 * 1024 * 1024
    return 64 * 1024 * 1024              # v5e / v6e: 128 MiB physical


def _choose_block_n(H, N, C, itemsize, vmem_limit_bytes,
                    *, min_steps=2, target_block_bytes=2 * 1024 * 1024):
    """Batch elements per grid step.

    Budgets with the *padded* VMEM footprint (lane padding to 128, dtype
    sublane multiple), keeps >= min_steps (preferably 4) evenly-sized grid
    steps so the pipeline overlaps and v7x's 2 TensorCores both get work,
    and prefers a block size that divides N evenly.
    """
    sub = {4: 8, 2: 16, 1: 32}.get(itemsize, 8)   # sublane multiple for the Bn axis
    if N <= sub:
        return N                                   # block == full dim (valid per tiling rules)
    lanes = _cdiv(C, 128) * 128                    # lane-padded channel width

    def fits(bn):
        xb = H * bn * lanes * itemsize             # one lane-padded x / out block
        wb = H * bn * 128 * 4                      # one (H, bn, 1) f32 w block (lane padded)
        tmp = 3 * H * bn * lanes * 4               # in-kernel f32 temporaries (x upcast, w*x, out)
        # 2x double-buffered input + 2x double-buffered output + w + temps
        return 4 * xb + 2 * wb + tmp <= int(0.7 * vmem_limit_bytes)

    # Target ~target_block_bytes of padded x per block, with enough grid steps
    # for pipelining / megacore sharding.
    per_n = H * lanes * itemsize
    steps = max(min_steps, _cdiv(N * per_n, target_block_bytes))
    if N // sub >= 4:
        steps = max(steps, 4)

    bn = _cdiv(_cdiv(N, steps), sub) * sub
    bn = min(bn, (N // sub) * sub)
    bn = max(bn, sub)
    while bn > sub and not fits(bn):
        bn -= sub
    # Prefer an even division of N (no ragged last block).
    b = bn
    while b >= sub:
        if N % b == 0:
            return b
        b -= sub
    # Ragged last block: still correct (per-n stats are independent; padded
    # columns never contaminate valid outputs and their writes are discarded).
    return bn


def set_norm(x, mask, weight, bias, *, block_n=None):
    """SetNorm forward.

    x: (H, N, C) float, mask: (N, H) bool (True = padded/invalid),
    weight/bias: broadcastable to (1, 1, C).  Returns (H, N, C) in x.dtype.
    """
    H, N, C = x.shape
    valid = jnp.logical_not(mask).astype(jnp.float32)        # (N, H)
    cnt = jnp.sum(valid, axis=1, keepdims=True)              # (N, 1)
    # clamp avoids NaN for fully-masked batch elements; their output is forced
    # to 0 by the in-kernel where() anyway (same final result as masked_fill_).
    w = valid / jnp.maximum(cnt, 1.0)                        # (N, H) f32
    # Pre-transpose the tiny weight array in the wrapper (free in XLA) so the
    # kernel never spends XLU slots on a per-step transpose.
    w = jnp.transpose(w, (1, 0))[:, :, None]                 # (H, N, 1) f32
    gamma = jnp.reshape(weight, (1, 1, C))
    beta = jnp.reshape(bias, (1, 1, C))

    vmem_limit = _vmem_limit_bytes()
    bn = (_choose_block_n(H, N, C, x.dtype.itemsize, vmem_limit)
          if block_n is None else block_n)
    grid = (pl.cdiv(N, bn),)

    # NOTE: if C < 128 (lane-sparse) the biggest remaining lever is a
    # lane-dense layout (pad C to 128 upstream); an in-kernel fix would cost an
    # extra HBM pass, so it is intentionally not done here.
    return pl.pallas_call(
        _setnorm_kernel,
        out_shape=jax.ShapeDtypeStruct((H, N, C), x.dtype),
        grid_spec=pltpu.PrefetchScalarGridSpec(
            num_scalar_prefetch=0,
            grid=grid,
            in_specs=[
                pl.BlockSpec((H, bn, C), lambda n: (0, n, 0)),   # x slab
                pl.BlockSpec((H, bn, 1), lambda n: (0, n, 0)),   # per-hit weights
                pl.BlockSpec((1, 1, C), lambda n: (0, 0, 0)),    # gamma
                pl.BlockSpec((1, 1, C), lambda n: (0, 0, 0)),    # beta
            ],
            out_specs=pl.BlockSpec((H, bn, C), lambda n: (0, n, 0)),
        ),
        compiler_params=pltpu.CompilerParams(
            dimension_semantics=("parallel",),
            vmem_limit_bytes=vmem_limit,
        ),
    )(x, w, gamma, beta)


def set_norm_ref(x, mask, weight, bias):
    """Pure-JAX reference mirroring the PyTorch forward exactly (two-pass)."""
    valid = (~mask).astype(jnp.float32)                                # (N, H)
    w = (valid / jnp.sum(valid, axis=1, keepdims=True)).T[:, :, None]  # (H, N, 1)
    means = jnp.mean(jnp.sum(x * w, axis=0, keepdims=True), axis=2, keepdims=True)
    variances = jnp.mean(jnp.sum(((x - means) ** 2) * w, axis=0, keepdims=True),
                         axis=2, keepdims=True)
    std = jnp.sqrt(variances + 1e-5)
    out = (x - means) / std * weight + bias
    return jnp.where(mask.T[:, :, None], 0.0, out)


if __name__ == "__main__":
    key = jax.random.PRNGKey(0)
    H, N, C = 16, 32, 32   # hits/seq=16, batch=32, normalized_shape=32

    x = jax.random.normal(key, (H, N, C), dtype=jnp.float32)
    # deterministic ragged mask: batch element n keeps the first 3 + (n % (H-3)) hits
    lengths = 3 + (jnp.arange(N) % (H - 3))                   # in [3, H-1]
    mask = jnp.arange(H)[None, :] >= lengths[:, None]         # (N, H), True = padded

    # SetNorm.__init__: weight = ones((1,1,C)), bias = zeros((1,1,C)); perturb
    # deterministically so the affine path is exercised.
    weight = (jnp.ones((1, 1, C), jnp.float32)
              + 0.1 * jnp.arange(C, dtype=jnp.float32)[None, None, :] / C)
    bias = jnp.zeros((1, 1, C), jnp.float32) + 0.05

    out = jax.block_until_ready(set_norm(x, mask, weight, bias))
    ref = set_norm_ref(x, mask, weight, bias)

    assert out.shape == (H, N, C) and out.dtype == x.dtype
    assert jnp.allclose(out, ref, rtol=1e-4, atol=1e-4), "mismatch vs reference"
    print("KERNEL_OK")
</pallas_src>

<mosaic_0001>
module attributes {stable_mosaic.version = 11 : i64} {
  func.func @_setnorm_kernel(%arg0: i32, %arg1: memref<16x8x32xf32, #tpu.memory_space<vmem>>, %arg2: memref<16x8x1xf32, #tpu.memory_space<vmem>>, %arg3: memref<1x1x32xf32, #tpu.memory_space<vmem>>, %arg4: memref<1x1x32xf32, #tpu.memory_space<vmem>>, %arg5: memref<16x8x32xf32, #tpu.memory_space<vmem>>) attributes {dimension_semantics = [#tpu.dimension_semantics<parallel>], iteration_bounds = array<i64: 4>, scalar_prefetch = 0 : i64, scratch_operands = 0 : i64, tpu.core_type = #tpu.core_type<tc>, window_params = [{transform_indices = @transform_0, window_bounds = array<i64: 16, 8, 32>}, {transform_indices = @transform_1, window_bounds = array<i64: 16, 8, 1>}, {pipeline_mode = #tpu.pipeline_mode<synchronous>, transform_indices = @transform_2, window_bounds = array<i64: 1, 1, 32>}, {pipeline_mode = #tpu.pipeline_mode<synchronous>, transform_indices = @transform_3, window_bounds = array<i64: 1, 1, 32>}, {transform_indices = @transform_4, window_bounds = array<i64: 16, 8, 32>}]} {
    %c0 = arith.constant 0 : index
    %c0_0 = arith.constant 0 : index
    %c0_1 = arith.constant 0 : index
    %0 = vector.load %arg1[%c0, %c0_0, %c0_1] : memref<16x8x32xf32, #tpu.memory_space<vmem>>, vector<16x8x32xf32>
    %c0_2 = arith.constant 0 : index
    %c0_3 = arith.constant 0 : index
    %c0_4 = arith.constant 0 : index
    %1 = vector.load %arg2[%c0_2, %c0_3, %c0_4] : memref<16x8x1xf32, #tpu.memory_space<vmem>>, vector<16x8x1xf32>
    %2 = vector.broadcast %1 : vector<16x8x1xf32> to vector<16x8x32xf32>
    %3 = arith.mulf %0, %2 : vector<16x8x32xf32>
    %cst = arith.constant dense<0.000000e+00> : vector<8x32xf32>
    %4 = vector.multi_reduction <add>, %3, %cst [0] : vector<16x8x32xf32> to vector<8x32xf32>
    %5 = vector.shape_cast %4 : vector<8x32xf32> to vector<1x8x32xf32>
    %6 = arith.mulf %3, %0 : vector<16x8x32xf32>
    %cst_5 = arith.constant dense<0.000000e+00> : vector<8x32xf32>
    %7 = vector.multi_reduction <add>, %6, %cst_5 [0] : vector<16x8x32xf32> to vector<8x32xf32>
    %8 = vector.shape_cast %7 : vector<8x32xf32> to vector<1x8x32xf32>
    %cst_6 = arith.constant dense<0.000000e+00> : vector<1x8xf32>
    %9 = vector.multi_reduction <add>, %5, %cst_6 [2] : vector<1x8x32xf32> to vector<1x8xf32>
    %10 = vector.shape_cast %9 : vector<1x8xf32> to vector<1x8x1xf32>
    %cst_7 = arith.constant 3.125000e-02 : f32
    %11 = vector.broadcast %cst_7 : f32 to vector<1x8x1xf32>
    %12 = arith.mulf %10, %11 : vector<1x8x1xf32>
    %cst_8 = arith.constant dense<0.000000e+00> : vector<1x8xf32>
    %13 = vector.multi_reduction <add>, %8, %cst_8 [2] : vector<1x8x32xf32> to vector<1x8xf32>
    %14 = vector.shape_cast %13 : vector<1x8xf32> to vector<1x8x1xf32>
    %cst_9 = arith.constant 3.125000e-02 : f32
    %15 = vector.broadcast %cst_9 : f32 to vector<1x8x1xf32>
    %16 = arith.mulf %14, %15 : vector<1x8x1xf32>
    %17 = arith.mulf %12, %12 : vector<1x8x1xf32>
    %18 = arith.subf %16, %17 : vector<1x8x1xf32>
    %cst_10 = arith.constant 0.000000e+00 : f32
    %19 = vector.broadcast %cst_10 : f32 to vector<1x8x1xf32>
    %20 = arith.maximumf %18, %19 : vector<1x8x1xf32>
    %c0_11 = arith.constant 0 : index
    %c0_12 = arith.constant 0 : index
    %c0_13 = arith.constant 0 : index
    %21 = vector.load %arg3[%c0_11, %c0_12, %c0_13] : memref<1x1x32xf32, #tpu.memory_space<vmem>>, vector<1x1x32xf32>
    %c0_14 = arith.constant 0 : index
    %c0_15 = arith.constant 0 : index
    %c0_16 = arith.constant 0 : index
    %22 = vector.load %arg4[%c0_14, %c0_15, %c0_16] : memref<1x1x32xf32, #tpu.memory_space<vmem>>, vector<1x1x32xf32>
    %cst_17 = arith.constant 9.99999974E-6 : f32
    %23 = vector.broadcast %cst_17 : f32 to vector<1x8x1xf32>
    %24 = arith.addf %20, %23 : vector<1x8x1xf32>
    %25 = math.rsqrt %24 : vector<1x8x1xf32>
    %26 = vector.broadcast %25 : vector<1x8x1xf32> to vector<1x8x32xf32>
    %27 = vector.broadcast %21 : vector<1x1x32xf32> to vector<1x8x32xf32>
    %28 = arith.mulf %26, %27 : vector<1x8x32xf32>
    %29 = vector.broadcast %12 : vector<1x8x1xf32> to vector<1x8x32xf32>
    %30 = arith.mulf %29, %28 : vector<1x8x32xf32>
    %31 = vector.broadcast %22 : vector<1x1x32xf32> to vector<1x8x32xf32>
    %32 = arith.subf %31, %30 : vector<1x8x32xf32>
    %33 = vector.broadcast %28 : vector<1x8x32xf32> to vector<16x8x32xf32>
    %34 = arith.mulf %0, %33 : vector<16x8x32xf32>
    %35 = vector.broadcast %32 : vector<1x8x32xf32> to vector<16x8x32xf32>
    %36 = arith.addf %34, %35 : vector<16x8x32xf32>
    %cst_18 = arith.constant 0.000000e+00 : f32
    %37 = vector.broadcast %cst_18 : f32 to vector<16x8x1xf32>
    %38 = arith.cmpf ogt, %1, %37 : vector<16x8x1xf32>
    %cst_19 = arith.constant 0.000000e+00 : f32
    %39 = vector.shape_cast %38 : vector<16x8x1xi1> to vector<16x8x1xi1>
    %40 = vector.broadcast %39 : vector<16x8x1xi1> to vector<16x8x32xi1>
    %41 = vector.broadcast %cst_19 : f32 to vector<16x8x32xf32>
    %42 = arith.select %40, %36, %41 : vector<16x8x32xi1>, vector<16x8x32xf32>
    %c0_20 = arith.constant 0 : index
    %c0_21 = arith.constant 0 : index
    %c0_22 = arith.constant 0 : index
    %43 = vector.load %arg5[%c0_20, %c0_21, %c0_22] : memref<16x8x32xf32, #tpu.memory_space<vmem>>, vector<16x8x32xf32>
    tpu.vector_store %arg5[%c0_20, %c0_21, %c0_22], %42 {strides = array<i32>} : memref<16x8x32xf32, #tpu.memory_space<vmem>>, vector<16x8x32xf32>,
    return
  }
  func.func @transform_0(%arg0: i32) -> (i32, i32, i32) {
    %c0_i32 = arith.constant 0 : i32
    %c0_i32_0 = arith.constant 0 : i32
    %c0_i32_1 = arith.constant 0 : i32
    return %c0_i32, %arg0, %c0_i32_0 : i32, i32, i32
  }
  func.func @transform_1(%arg0: i32) -> (i32, i32, i32) {
    %c0_i32 = arith.constant 0 : i32
    %c0_i32_0 = arith.constant 0 : i32
    %c0_i32_1 = arith.constant 0 : i32
    return %c0_i32, %arg0, %c0_i32_0 : i32, i32, i32
  }
  func.func @transform_2(%arg0: i32) -> (i32, i32, i32) {
    %c0_i32 = arith.constant 0 : i32
    %c0_i32_0 = arith.constant 0 : i32
    %c0_i32_1 = arith.constant 0 : i32
    %c0_i32_2 = arith.constant 0 : i32
    return %c0_i32, %c0_i32_0, %c0_i32_1 : i32, i32, i32
  }
  func.func @transform_3(%arg0: i32) -> (i32, i32, i32) {
    %c0_i32 = arith.constant 0 : i32
    %c0_i32_0 = arith.constant 0 : i32
    %c0_i32_1 = arith.constant 0 : i32
    %c0_i32_2 = arith.constant 0 : i32
    return %c0_i32, %c0_i32_0, %c0_i32_1 : i32, i32, i32
  }
  func.func @transform_4(%arg0: i32) -> (i32, i32, i32) {
    %c0_i32 = arith.constant 0 : i32
    %c0_i32_0 = arith.constant 0 : i32
    %c0_i32_1 = arith.constant 0 : i32
    return %c0_i32, %arg0, %c0_i32_0 : i32, i32, i32
  }
}

</mosaic_0001>

<bundles_post_ra>
// kernel: tpu_custom_call.1
= control target key start
LH: loop header
LB: loop body
LE: loop exit
PB: predicated region body
PF: predicated region fallthrough
CT: control target
= control target key end

     0   :  { %9 = vsyncpa [#allocation5], 0  ;;  %s1487_s0 = inlined_call_operand.vmem [shape: f32[16,32,32], index: 0, kind: input, shape index: {}]   ;;  %s1488_s1 = inlined_call_operand.vmem [shape: f32[16,32,1], index: 1, kind: input, shape index: {}]   ;;  %s1489_s2 = inlined_call_operand.vmem [shape: f32[1,1,32], index: 2, kind: input, shape index: {}]   ;;  %s1490_s3 = inlined_call_operand.vmem [shape: f32[1,1,32], index: 3, kind: input, shape index: {}]   ;;  %s1491_s4 = inlined_call_operand.hbm [shape: f32[16,32,32], index: 4, kind: output, shape index: {}]  }
   0x1   :  { %11 = vsyncpa [#allocation5 + $0x1], 0  ;;  %s1058_s15 = smov 0   ;;  %s1060_s16 = smov 0  }
   0x2   :  { %s1062_s17 = smov 0   ;;  %s1064_s18 = smov 0  }
   0x3 LB: > { %s901_s19 = sadd.s32 4294967295, %s1026_s18   ;;  %s902_s20 = sadd.s32 4294967294, %s1026_s18   ;;  %s1026_s18 = sphi %s1064_s18, %s1499_s18   ;;  %s1022_s17 = sphi %s1062_s17, %s1498_s17   ;;  %s1018_s16 = sphi %s1060_s16, %s1497_s16   ;;  %s1014_s15 = sphi %s1058_s15, %s1496_s15  }
   0x4   : > { %s1081_s21 = sadd.s32 1, %s1026_s18   ;;  %s24_s22 = sadd.s32 1, %s1022_s17 }
   0x5   : > { %s21_s23 = ssub.s32 %s1026_s18, %s1081_s21  ;;  %p31_p0 = scmp.ne.s32.totalorder %s1022_s17, %s1018_s16 }
   0x6   : > { %p22_p1 = scmp.eq.s32.totalorder %s21_s23, 0  ;;  %p32_p2 = scmp.eq.s32.totalorder %s1026_s18, 0 }
   0x7   : > { %p129_p3 = scmp.eq.s32.totalorder %s901_s19, 3  ;;  %p134_p4 = scmp.ne.s32.totalorder %s1018_s16, %s1014_s15 }
   0x8   : > { %s1094_s24 = scalar_select %p22_p1, %s1022_s17, %s24_s22  }
   0x9   : > { %p1096_p5 = por %p32_p2, %p31_p0  ;;  %p1100_p6 = por %p129_p3, %p31_p0 }
   0xa   : > { %p135_p7 = scmp.eq.s32.totalorder %s902_s20, 3  ;;  %p904_p9 = scmp.ge.s32.totalorder %s1026_s18, 4 }
   0xc   : > { %p1104_p8 = por %p135_p7, %p134_p4  ;;  %157 = sbr.rel (%p904_p9) target bundleno = 57 (0x39), region = 24 }
  0x11   : > { %160 = sbr.rel (!%p1096_p5) target bundleno = 37 (0x25), region = 28  ;;  %s162_s28 = sand.u32 (%p1096_p5), 1, %s1022_s17  }
  0x12   : > { %s906_s29 = sshll.u32 (%p1096_p5), %s1026_s18, 3  ;;  %s905_s30 = sshll.u32 (%p1096_p5), %s162_s28, 7 }
  0x13   : > { %s1116_s7 = scalar_lea.vmem (%p1096_p5), %s1487_s0, %s906_s29  ;;  %s164_s8 = scalar_lea.vmem (%p1096_p5), [#allocation2], %s905_s30 }
  0x14   : > { %v225_v0 = vld [vmem:[%s1116_s7] sm:$0xff] (%p1096_p5) }
  0x15   : > { %v227_v1 = vld [vmem:[%s1116_s7 + $0x20] sm:$0xff] (%p1096_p5)  ;;  %226 = vst [vmem:[%s164_s8] sm:$0xff] (%p1096_p5), %v225_v0 }
  0x16   : > { %v229_v2 = vld [vmem:[%s1116_s7 + $0x40] sm:$0xff]  ;;  %228 = vst [vmem:[%s164_s8 + $0x8] sm:$0xff] %v227_v1 }
  0x17   : > { %230 = vst [vmem:[%s164_s8 + $0x10] sm:$0xff] %v229_v2  ;;  %v231_v3 = vld [vmem:[%s1116_s7 + $0x60] sm:$0xff] }
  0x18   : > { %v233_v4 = vld [vmem:[%s1116_s7 + $0x80] sm:$0xff]  ;;  %232 = vst [vmem:[%s164_s8 + $0x18] sm:$0xff] %v231_v3 }
  0x19   : > { %v235_v5 = vld [vmem:[%s1116_s7 + $0xa0] sm:$0xff]  ;;  %234 = vst [vmem:[%s164_s8 + $0x20] sm:$0xff] %v233_v4 }
  0x1a   : > { %236 = vst [vmem:[%s164_s8 + $0x28] sm:$0xff] %v235_v5  ;;  %v237_v6 = vld [vmem:[%s1116_s7 + $0xc0] sm:$0xff] }
  0x1b   : > { %v239_v7 = vld [vmem:[%s1116_s7 + $0xe0] sm:$0xff]  ;;  %238 = vst [vmem:[%s164_s8 + $0x30] sm:$0xff] %v237_v6 }
  0x1c   : > { %v241_v8 = vld [vmem:[%s1116_s7 + $0x100] sm:$0xff]  ;;  %240 = vst [vmem:[%s164_s8 + $0x38] sm:$0xff] %v239_v7 }
  0x1d   : > { %242 = vst [vmem:[%s164_s8 + $0x40] sm:$0xff] %v241_v8  ;;  %v243_v9 = vld [vmem:[%s1116_s7 + $0x120] sm:$0xff] }
  0x1e   : > { %v245_v10 = vld [vmem:[%s1116_s7 + $0x140] sm:$0xff]  ;;  %244 = vst [vmem:[%s164_s8 + $0x48] sm:$0xff] %v243_v9 }
  0x1f   : > { %v247_v11 = vld [vmem:[%s1116_s7 + $0x160] sm:$0xff]  ;;  %246 = vst [vmem:[%s164_s8 + $0x50] sm:$0xff] %v245_v10 }
  0x20   : > { %248 = vst [vmem:[%s164_s8 + $0x58] sm:$0xff] %v247_v11  ;;  %v249_v12 = vld [vmem:[%s1116_s7 + $0x180] sm:$0xff] }
  0x21   : > { %v251_v13 = vld [vmem:[%s1116_s7 + $0x1a0] sm:$0xff]  ;;  %250 = vst [vmem:[%s164_s8 + $0x60] sm:$0xff] %v249_v12 }
  0x22   : > { %v253_v14 = vld [vmem:[%s1116_s7 + $0x1c0] sm:$0xff]  ;;  %252 = vst [vmem:[%s164_s8 + $0x68] sm:$0xff] %v251_v13 }
  0x23   : > { %254 = vst [vmem:[%s164_s8 + $0x70] sm:$0xff] %v253_v14  ;;  %v255_v15 = vld [vmem:[%s1116_s7 + $0x1e0] sm:$0xff] }
  0x24   : > { %256 = vst [vmem:[%s164_s8 + $0x78] sm:$0xff] %v255_v15 }
  0x25 PF: > { %262 = sbr.rel (!%p1096_p5) target bundleno = 57 (0x39), region = 66  ;;  %s264_s9 = sand.u32 (%p1096_p5), 1, %s1022_s17  }
  0x26   : > { %s908_s10 = sshll.u32 (%p1096_p5), %s1026_s18, 3  ;;  %s907_s11 = sshll.u32 (%p1096_p5), %s264_s9, 7 }
  0x27   : > { %s1141_s14 = scalar_lea.vmem (%p1096_p5), %s1488_s1, %s908_s10  ;;  %s266_s20 = scalar_lea.vmem (%p1096_p5), [#allocation3], %s907_s11 }
  0x28   : > { %v327_v16 = vld [vmem:[%s1141_s14] sm:$0xff] (%p1096_p5) }
  0x29   : > { %v329_v17 = vld [vmem:[%s1141_s14 + $0x20] sm:$0xff] (%p1096_p5)  ;;  %328 = vst [vmem:[%s266_s20] sm:$0xff] (%p1096_p5), %v327_v16 }
  0x2a   : > { %v331_v18 = vld [vmem:[%s1141_s14 + $0x40] sm:$0xff]  ;;  %330 = vst [vmem:[%s266_s20 + $0x8] sm:$0xff] %v329_v17 }
  0x2b   : > { %332 = vst [vmem:[%s266_s20 + $0x10] sm:$0xff] %v331_v18  ;;  %v333_v19 = vld [vmem:[%s1141_s14 + $0x60] sm:$0xff] }
  0x2c   : > { %v335_v20 = vld [vmem:[%s1141_s14 + $0x80] sm:$0xff]  ;;  %334 = vst [vmem:[%s266_s20 + $0x18] sm:$0xff] %v333_v19 }
  0x2d   : > { %v337_v21 = vld [vmem:[%s1141_s14 + $0xa0] sm:$0xff]  ;;  %336 = vst [vmem:[%s266_s20 + $0x20] sm:$0xff] %v335_v20 }
  0x2e   : > { %338 = vst [vmem:[%s266_s20 + $0x28] sm:$0xff] %v337_v21  ;;  %v339_v22 = vld [vmem:[%s1141_s14 + $0xc0] sm:$0xff] }
  0x2f   : > { %v341_v23 = vld [vmem:[%s1141_s14 + $0xe0] sm:$0xff]  ;;  %340 = vst [vmem:[%s266_s20 + $0x30] sm:$0xff] %v339_v22 }
  0x30   : > { %v343_v24 = vld [vmem:[%s1141_s14 + $0x100] sm:$0xff]  ;;  %342 = vst [vmem:[%s266_s20 + $0x38] sm:$0xff] %v341_v23 }
  0x31   : > { %344 = vst [vmem:[%s266_s20 + $0x40] sm:$0xff] %v343_v24  ;;  %v345_v25 = vld [vmem:[%s1141_s14 + $0x120] sm:$0xff] }
  0x32   : > { %v347_v26 = vld [vmem:[%s1141_s14 + $0x140] sm:$0xff]  ;;  %346 = vst [vmem:[%s266_s20 + $0x48] sm:$0xff] %v345_v25 }
  0x33   : > { %v349_v27 = vld [vmem:[%s1141_s14 + $0x160] sm:$0xff]  ;;  %348 = vst [vmem:[%s266_s20 + $0x50] sm:$0xff] %v347_v26 }
  0x34   : > { %350 = vst [vmem:[%s266_s20 + $0x58] sm:$0xff] %v349_v27  ;;  %v351_v28 = vld [vmem:[%s1141_s14 + $0x180] sm:$0xff] }
  0x35   : > { %v353_v29 = vld [vmem:[%s1141_s14 + $0x1a0] sm:$0xff]  ;;  %352 = vst [vmem:[%s266_s20 + $0x60] sm:$0xff] %v351_v28 }
  0x36   : > { %v355_v30 = vld [vmem:[%s1141_s14 + $0x1c0] sm:$0xff]  ;;  %354 = vst [vmem:[%s266_s20 + $0x68] sm:$0xff] %v353_v29 }
  0x37   : > { %356 = vst [vmem:[%s266_s20 + $0x70] sm:$0xff] %v355_v30  ;;  %v357_v31 = vld [vmem:[%s1141_s14 + $0x1e0] sm:$0xff] }
  0x38   : > { %358 = vst [vmem:[%s266_s20 + $0x78] sm:$0xff] %v357_v31 }
  0x39 PF: > { %p909_p10 = scmp.ge.s32.totalorder %s1026_s18, 1  ;;  %p363_p11 = scmp.lt.s32.totalorder %s1026_s18, 5 }
  0x3b   : > { %p364_p12 = pnand %p909_p10, %p363_p11 }
  0x3c   : > { %s370_s22 = sand.u32 (!%p364_p12), 1, %s1018_s16   ;;  %s916_s7 = sshll.u32 (!%p364_p12), %s901_s19, 7 }
  0x3d   : > { %367 = sbr.rel (%p364_p12) target bundleno = 424 (0x1a8), region = 104  ;;  %s1166_s23 = sshll.u32 (!%p364_p12), %s370_s22, 7 }
  0x3e   : > { %s379_s25 = scalar_lea.vmem (!%p364_p12), [#allocation3], %s1166_s23  ;;  %s1194_s28 = scalar_lea.vmem (!%p364_p12), [#allocation2], %s1166_s23 }
  0x3f   : > { %s1379_s8 = scalar_lea.vmem (!%p364_p12), [#allocation4], %s1166_s23  ;;  %s1397_s11 = scalar_lea.hbm (!%p364_p12), %s1491_s4, %s916_s7 }
  0x40   : > { %s816_s19 = sshll.u32 (!%p364_p12), %s1379_s8, 4  ;;  %s1447_s12 = scalar_lea.sflag (!%p364_p12), [#allocation5], %s370_s22  ;;  %s1411_s19 = int_to_ptr.vmem [resolvable:$true] %s816_s19 }
  0x41   : > { %s966_s13 = scalar_lea.vmem (!%p364_p12), %s1411_s19, 2048  ;;  %s1029_s14 = smov (!%p364_p12), [#allocation4]  }
  0x42   : > { %v1028_v32 = vmov 0   ;;  %v424_v33 = vld [vmem:[%s379_s25 + $0x10] sm:$0xff]  ;;  %v422_v34 = vld [vmem:[%s379_s25] sm:$0xff]  ;;  %v425_v35 = vld [vmem:[%s379_s25 + $0x18] sm:$0xff]  ;;  %p967_p13 = scmp.ne.s32.totalorder %s1411_s19, %s966_s13  ;;  %s970_s20 = sshll.u32 %s1029_s14, 4  ;;  %s971_s20 = int_to_ptr.vmem [resolvable:$false] %s970_s20 }
  0x43   : > { %963 = vset.pattern.permute.xlu1 %v1028_v32  ;;  %962 = vset.pattern.permute.xlu0 %v1028_v32  ;;  %v423_v36 = vld [vmem:[%s379_s25 + $0x8] sm:$0xff]  ;;  %v426_v38 = vld [vmem:[%s379_s25 + $0x20] sm:$0xff]  ;;  %v429_v39 = vld [vmem:[%s379_s25 + $0x38] sm:$0xff]  ;;  %vm675_vm0 = vcmp.gt.f32.partialorder %v422_v34, 0.0  ;;  %vm677_vm2 = vcmp.gt.f32.partialorder %v424_v33, 0.0  ;;  %vm678_vm3 = vcmp.gt.f32.partialorder %v425_v35, 0.0  ;;  %p973_p2 = scmp.lt.s32.totalorder %s1411_s19, %s971_s20 }
  0x44   : > { %450 = vperm.xlu1 %963, %v424_v33   ;;  %440 = vperm.xlu0 %962, %v422_v34   ;;  %v427_v37 = vld [vmem:[%s379_s25 + $0x28] sm:$0xff]  ;;  %v428_v40 = vld [vmem:[%s379_s25 + $0x30] sm:$0xff]  ;;  %v430_v42 = vld [vmem:[%s379_s25 + $0x40] sm:$0xff]  ;;  %vm676_vm1 = vcmp.gt.f32.partialorder %v423_v36, 0.0  ;;  %v691_v50 = vsel %vm675_vm0, 1, %v1028_v32  ;;  %v694_v51 = vsel %vm678_vm3, 1, %v1028_v32  ;;  %p968_p0 = pnand %p967_p13, %p1100_p6 }
  0x45   : > { %v431_v41 = vld [vmem:[%s379_s25 + $0x48] sm:$0xff]  ;;  %v433_v43 = vld [vmem:[%s379_s25 + $0x58] sm:$0xff]  ;;  %v432_v44 = vld [vmem:[%s379_s25 + $0x50] sm:$0xff]  ;;  %v692_v49 = vsel %vm676_vm1, 1, %v1028_v32  ;;  %v693_v52 = vsel %vm677_vm2, 1, %v1028_v32  ;;  %vm680_vm4 = vcmp.gt.f32.partialorder %v427_v37, 0.0 }
  0x46   : > { %v435_v45 = vld [vmem:[%s379_s25 + $0x68] sm:$0xff]  ;;  %v434_v46 = vld [vmem:[%s379_s25 + $0x60] sm:$0xff]  ;;  %v437_v47 = vld [vmem:[%s379_s25 + $0x78] sm:$0xff]  ;;  %vm679_vm5 = vcmp.gt.f32.partialorder %v426_v38, 0.0  ;;  %v696_v53 = vsel %vm680_vm4, 1, %v1028_v32  ;;  %vm682_vm6 = vcmp.gt.f32.partialorder %v429_v39, 0.0  ;;  %p969_p1 = pneg %p968_p0 }
  0x47   : > { %v436_v48 = vld [vmem:[%s379_s25 + $0x70] sm:$0xff]  ;;  %v695_v54 = vsel %vm679_vm5, 1, %v1028_v32  ;;  %vm681_vm7 = vcmp.gt.f32.partialorder %v428_v40, 0.0  ;;  %v698_v55 = vsel %vm682_vm6, 1, %v1028_v32  ;;  %vm684_vm8 = vcmp.gt.f32.partialorder %v431_v41, 0.0  ;;  %v1197_v1 = vld [vmem:[%s1194_s28] sm:$0xff] }
  0x48   : > { %455 = vperm.xlu1 %963, %v425_v35   ;;  %445 = vperm.xlu0 %962, %v423_v36   ;;  %v697_v56 = vsel %vm681_vm7, 1, %v1028_v32  ;;  %vm683_vm9 = vcmp.gt.f32.partialorder %v430_v42, 0.0  ;;  %v700_v57 = vsel %vm684_vm8, 1, %v1028_v32  ;;  %vm686_vm10 = vcmp.gt.f32.partialorder %v433_v43, 0.0  ;;  %v1200_v3 = vld [vmem:[%s1194_s28 + $0x10] sm:$0xff]  ;;  %v1204_v6 = vld [vmem:[%s1194_s28 + $0x18] sm:$0xff] }
  0x49   : > { %v699_v58 = vsel %vm683_vm9, 1, %v1028_v32  ;;  %v702_v59 = vsel %vm686_vm10, 1, %v1028_v32  ;;  %vm688_vm11 = vcmp.gt.f32.partialorder %v435_v45, 0.0  ;;  %vm690_vm12 = vcmp.gt.f32.partialorder %v437_v47, 0.0  ;;  %v1207_v7 = vld [vmem:[%s1194_s28 + $0x8] sm:$0xff]  ;;  %v1217_v15 = vld [vmem:[%s1194_s28 + $0x20] sm:$0xff] }
  0x4a   : > { %v1181_v60 = vsel %vm690_vm12, 1, %v1028_v32  ;;  %v704_v61 = vsel %vm688_vm11, 1, %v1028_v32  ;;  %vm685_vm13 = vcmp.gt.f32.partialorder %v432_v44, 0.0  ;;  %vm687_vm14 = vcmp.gt.f32.partialorder %v434_v46, 0.0  ;;  %v1214_v14 = vld [vmem:[%s1194_s28 + $0x28] sm:$0xff]  ;;  %v1230_v31 = vld [vmem:[%s1194_s28 + $0x38] sm:$0xff] }
  0x4b   : > { %v1185_v62 = vsel %vm685_vm13, 1, %v1028_v32  ;;  %v1188_v63 = vsel %vm687_vm14, 1, %v1028_v32  ;;  %vm689_vm15 = vcmp.gt.f32.partialorder %v436_v48, 0.0  ;;  %vm534_vm0 = vcmask 261120   ;;  %s972_s23 = scalar_lea.vmem %s971_s20, 4096 }
  0x4c   : > { %465 = vperm.xlu1 %963, %v427_v37   ;;  %460 = vperm.xlu0 %962, %v426_v38   ;;  %v1191_v0 = vsel %vm689_vm15, 1, %v1028_v32  ;;  %v1233_v32 = vld [vmem:[%s1194_s28 + $0x30] sm:$0xff]  ;;  %p974_p3 = scmp.lt.s32.totalorder %s972_s23, %s966_s13 }
  0x4e   : > { %p975_p4 = por %p974_p3, %p973_p2 }
  0x50   : > { %475 = vperm.xlu1 %963, %v429_v39   ;;  %470 = vperm.xlu0 %962, %v428_v40   ;;  %p976_p5 = pnand %p975_p4, %p969_p1 }
  0x54   : > { %485 = vperm.xlu1 %963, %v431_v41   ;;  %480 = vperm.xlu0 %962, %v430_v42  }
  0x58   : > { %495 = vperm.xlu1 %963, %v433_v43   ;;  %490 = vperm.xlu0 %962, %v432_v44  }
  0x5c   : > { %505 = vperm.xlu1 %963, %v435_v45   ;;  %500 = vperm.xlu0 %962, %v434_v46  }
  0x60   : > { %515 = vperm.xlu1 %963, %v437_v47   ;;  %510 = vperm.xlu0 %962, %v436_v48   ;;  %v1244_v47 = vld [vmem:[%s1194_s28 + $0x48] sm:$0xff]  ;;  %v1247_v48 = vld [vmem:[%s1194_s28 + $0x40] sm:$0xff] }
  0x64   : > { %711 = vperm.xlu1 %963, %v692_v49   ;;  %708 = vperm.xlu0 %962, %v691_v50  }
  0x68   : > { %717 = vperm.xlu1 %963, %v694_v51   ;;  %714 = vperm.xlu0 %962, %v693_v52  }
  0x6c   : > { %723 = vperm.xlu1 %963, %v696_v53   ;;  %720 = vperm.xlu0 %962, %v695_v54  }
  0x70   : > { %729 = vperm.xlu1 %963, %v698_v55   ;;  %726 = vperm.xlu0 %962, %v697_v56  }
  0x74   : > { %735 = vperm.xlu1 %963, %v700_v57   ;;  %732 = vperm.xlu0 %962, %v699_v58  }
  0x78   : > { %741 = vperm.xlu1 %963, %v702_v59  }
  0x7c   : > { %747 = vperm.xlu1 %963, %v704_v61  }
  0xbf   : > { %v451_v2 = vpop.permute.xlu1 %450  ;;  %v441_v4 = vpop.permute.xlu0 %440 }
  0xc0   : > { %v518_v5 = vmul.f32 %v441_v4, %v1197_v1  ;;  %v520_v8 = vmul.f32 %v451_v2, %v1200_v3 }
  0xc2   : > { %v566_v11 = vmul.f32 %v518_v5, %v1197_v1  ;;  %v568_v16 = vmul.f32 %v520_v8, %v1200_v3  ;;  %v535_v17 = vsel %vm534_vm0, %v518_v5, 0.0  ;;  %v538_v20 = vsel %vm534_vm0, %v520_v8, 0.0  ;;  %v1258_v5 = vld [vmem:[%s1194_s28 + $0x58] sm:$0xff]  ;;  %v1261_v8 = vld [vmem:[%s1194_s28 + $0x50] sm:$0xff] }
  0xc3   : > { %v456_v9 = vpop.permute.xlu1 %455  ;;  %v446_v10 = vpop.permute.xlu0 %445 }
  0xc4   : > { %v521_v12 = vmul.f32 %v456_v9, %v1204_v6  ;;  %v519_v13 = vmul.f32 %v446_v10, %v1207_v7  ;;  %v582_v25 = vsel %vm534_vm0, %v566_v11, 0.0  ;;  %v585_v33 = vsel %vm534_vm0, %v568_v16, 0.0 }
  0xc6   : > { %v536_v18 = vsel %vm534_vm0, %v519_v13, 0.0  ;;  %v567_v19 = vmul.f32 %v519_v13, %v1207_v7  ;;  %v569_v21 = vmul.f32 %v521_v12, %v1204_v6  ;;  %v540_v34 = vsel %vm534_vm0, %v521_v12, 0.0 }
  0xc7   : > { %v537_v22 = vadd.f32 %v536_v18, %v535_v17  ;;  %v466_v23 = vpop.permute.xlu1 %465  ;;  %v461_v24 = vpop.permute.xlu0 %460 }
  0xc8   : > { %v583_v26 = vsel %vm534_vm0, %v567_v19, 0.0  ;;  %v523_v27 = vmul.f32 %v466_v23, %v1214_v14  ;;  %v522_v28 = vmul.f32 %v461_v24, %v1217_v15  ;;  %v587_v36 = vsel %vm534_vm0, %v569_v21, 0.0 }
  0xc9   : > { %v539_v29 = vadd.f32 %v538_v20, %v537_v22  ;;  %v584_v30 = vadd.f32 %v583_v26, %v582_v25  ;;  %v1272_v25 = vld [vmem:[%s1194_s28 + $0x68] sm:$0xff]  ;;  %v1275_v26 = vld [vmem:[%s1194_s28 + $0x60] sm:$0xff] }
  0xca   : > { %v570_v35 = vmul.f32 %v522_v28, %v1217_v15  ;;  %v571_v41 = vmul.f32 %v523_v27, %v1214_v14  ;;  %v542_v42 = vsel %vm534_vm0, %v522_v28, 0.0  ;;  %v544_v49 = vsel %vm534_vm0, %v523_v27, 0.0 }
  0xcb   : > { %v586_v37 = vadd.f32 %v585_v33, %v584_v30  ;;  %v541_v38 = vadd.f32 %v540_v34, %v539_v29  ;;  %v476_v39 = vpop.permute.xlu1 %475  ;;  %v471_v40 = vpop.permute.xlu0 %470 }
  0xcc   : > { %v525_v43 = vmul.f32 %v476_v39, %v1230_v31  ;;  %v524_v44 = vmul.f32 %v471_v40, %v1233_v32  ;;  %v589_v50 = vsel %vm534_vm0, %v570_v35, 0.0  ;;  %v591_v57 = vsel %vm534_vm0, %v571_v41, 0.0 }
  0xcd   : > { %v543_v45 = vadd.f32 %v542_v42, %v541_v38  ;;  %v588_v46 = vadd.f32 %v587_v36, %v586_v37 }
  0xce   : > { %v572_v51 = vmul.f32 %v524_v44, %v1233_v32  ;;  %v573_v53 = vmul.f32 %v525_v43, %v1230_v31  ;;  %v546_v58 = vsel %vm534_vm0, %v524_v44, 0.0  ;;  %v548_v9 = vsel %vm534_vm0, %v525_v43, 0.0  ;;  %v1286_v43 = vld [vmem:[%s1194_s28 + $0x78] sm:$0xff]  ;;  %v1289_v44 = vld [vmem:[%s1194_s28 + $0x70] sm:$0xff] }
  0xcf   : > { %v590_v52 = vadd.f32 %v589_v50, %v588_v46  ;;  %v545_v54 = vadd.f32 %v544_v49, %v543_v45  ;;  %v486_v55 = vpop.permute.xlu1 %485  ;;  %v481_v56 = vpop.permute.xlu0 %480 }
  0xd0   : > { %v527_v59 = vmul.f32 %v486_v55, %v1244_v47  ;;  %v526_v61 = vmul.f32 %v481_v56, %v1247_v48  ;;  %v593_v10 = vsel %vm534_vm0, %v572_v51, 0.0  ;;  %v595_v12 = vsel %vm534_vm0, %v573_v53, 0.0 }
  0xd1   : > { %v547_v2 = vadd.f32 %v546_v58, %v545_v54  ;;  %v592_v4 = vadd.f32 %v591_v57, %v590_v52 }
  0xd2   : > { %v574_v11 = vmul.f32 %v526_v61, %v1247_v48  ;;  %v575_v19 = vmul.f32 %v527_v59, %v1244_v47  ;;  %v550_v20 = vsel %vm534_vm0, %v526_v61, 0.0  ;;  %v552_v27 = vsel %vm534_vm0, %v527_v59, 0.0 }
  0xd3   : > { %v594_v13 = vadd.f32 %v593_v10, %v592_v4  ;;  %v549_v16 = vadd.f32 %v548_v9, %v547_v2  ;;  %v496_v17 = vpop.permute.xlu1 %495  ;;  %v491_v18 = vpop.permute.xlu0 %490 }
  0xd4   : > { %v529_v21 = vmul.f32 %v496_v17, %v1258_v5  ;;  %v528_v22 = vmul.f32 %v491_v18, %v1261_v8  ;;  %v597_v28 = vsel %vm534_vm0, %v574_v11, 0.0  ;;  %v599_v37 = vsel %vm534_vm0, %v575_v19, 0.0 }
  0xd5   : > { %v551_v23 = vadd.f32 %v550_v20, %v549_v16  ;;  %v596_v24 = vadd.f32 %v595_v12, %v594_v13 }
  0xd6   : > { %v576_v29 = vmul.f32 %v528_v22, %v1261_v8  ;;  %v577_v33 = vmul.f32 %v529_v21, %v1258_v5  ;;  %v554_v38 = vsel %vm534_vm0, %v528_v22, 0.0  ;;  %v556_v45 = vsel %vm534_vm0, %v529_v21, 0.0 }
  0xd7   : > { %v598_v30 = vadd.f32 %v597_v28, %v596_v24  ;;  %v553_v34 = vadd.f32 %v552_v27, %v551_v23  ;;  %v506_v35 = vpop.permute.xlu1 %505  ;;  %v501_v36 = vpop.permute.xlu0 %500 }
  0xd8   : > { %v531_v39 = vmul.f32 %v506_v35, %v1272_v25  ;;  %v530_v40 = vmul.f32 %v501_v36, %v1275_v26  ;;  %v601_v46 = vsel %vm534_vm0, %v576_v29, 0.0  ;;  %v603_v50 = vsel %vm534_vm0, %v577_v33, 0.0 }
  0xd9   : > { %v555_v41 = vadd.f32 %v554_v38, %v553_v34  ;;  %v600_v42 = vadd.f32 %v599_v37, %v598_v30 }
  0xda   : > { %v578_v49 = vmul.f32 %v530_v40, %v1275_v26  ;;  %v579_v55 = vmul.f32 %v531_v39, %v1272_v25  ;;  %v558_v56 = vsel %vm534_vm0, %v530_v40, 0.0  ;;  %v560_v2 = vsel %vm534_vm0, %v531_v39, 0.0 }
  0xdb   : > { %v602_v51 = vadd.f32 %v601_v46, %v600_v42  ;;  %v557_v52 = vadd.f32 %v556_v45, %v555_v41  ;;  %v516_v53 = vpop.permute.xlu1 %515  ;;  %v511_v54 = vpop.permute.xlu0 %510 }
  0xdc   : > { %v533_v57 = vmul.f32 %v516_v53, %v1286_v43  ;;  %v532_v58 = vmul.f32 %v511_v54, %v1289_v44  ;;  %v605_v4 = vsel %vm534_vm0, %v578_v49, 0.0  ;;  %v607_v12 = vsel %vm534_vm0, %v579_v55, 0.0  ;;  %v913_v53 = vld [vmem:[%s1489_s2] ss:$0 sm:$0xff] }
  0xdd   : > { %v559_v59 = vadd.f32 %v558_v56, %v557_v52  ;;  %v604_v61 = vadd.f32 %v603_v50, %v602_v51 }
  0xde   : > { %v580_v9 = vmul.f32 %v532_v58, %v1289_v44  ;;  %v581_v13 = vmul.f32 %v533_v57, %v1286_v43  ;;  %v562_v16 = vsel %vm534_vm0, %v532_v58, 0.0  ;;  %v564_v19 = vsel %vm534_vm0, %v533_v57, 0.0  ;;  %v914_v58 = vld [vmem:[%s1490_s3] ss:$0 sm:$0xff] }
  0xdf   : > { %v606_v10 = vadd.f32 %v605_v4, %v604_v61  ;;  %v561_v11 = vadd.f32 %v560_v2, %v559_v59  ;;  %v1314_v29 = vpop.permute.xlu1 %711  ;;  %v1318_v33 = vpop.permute.xlu0 %708 }
  0xe0   : > { %v609_v20 = vsel %vm534_vm0, %v580_v9, 0.0  ;;  %v611_v23 = vsel %vm534_vm0, %v581_v13, 0.0  ;;  %vm756_vm5 = vcmp.eq.s32.totalorder %v1314_v29, 1  ;;  %vm755_vm6 = vcmp.eq.s32.totalorder %v1318_v33, 1 }
  0xe1   : > { %v563_v17 = vadd.f32 %v562_v16, %v561_v11  ;;  %v608_v18 = vadd.f32 %v607_v12, %v606_v10 }
  0xe3   : > { %v565_v21 = vadd.f32 %v564_v19, %v563_v17  ;;  %v610_v22 = vadd.f32 %v609_v20, %v608_v18  ;;  %v1316_v30 = vpop.permute.xlu1 %717  ;;  %v1322_v35 = vpop.permute.xlu0 %714 }
  0xe4   : > { %vm758_vm7 = vcmp.eq.s32.totalorder %v1316_v30, 1  ;;  %vm757_vm8 = vcmp.eq.s32.totalorder %v1322_v35, 1 }
  0xe5   : > { %v613_v24 = vsel %vm534_vm0, %v565_v21, 0.0  ;;  %v612_v27 = vadd.f32 %v611_v23, %v610_v22 }
  0xe6   : > { %614 = vadd.xlane.f32.xlu0 %v613_v24 }
  0xe7   : > { %v617_v28 = vsel %vm534_vm0, %v612_v27, 0.0  ;;  %v1320_v34 = vpop.permute.xlu1 %723  ;;  %v1326_v37 = vpop.permute.xlu0 %720 }
  0xe8   : > { %618 = vadd.xlane.f32.xlu1 %v617_v28  ;;  %vm759_vm10 = vcmp.eq.s32.totalorder %v1326_v37, 1 }
  0xeb   : > { %v1324_v36 = vpop.permute.xlu1 %729 }
  0xec   : > { %vm762_vm11 = vcmp.eq.s32.totalorder %v1324_v36, 1 }
  0xf9   : > { %753 = vperm.xlu1 %963, %v1181_v60   ;;  %v1328_v60 = vpop.permute.xlu1 %735 }
  0xfa   : > { %vm764_vm13 = vcmp.eq.s32.totalorder %v1328_v60, 1 }
  0xfc   : > { %738 = vperm.xlu0 %962, %v1185_v62   ;;  %v1330_v62 = vpop.permute.xlu0 %726 }
  0xfd   : > { %vm761_vm12 = vcmp.eq.s32.totalorder %v1330_v62, 1 }
 0x100   : > { %744 = vperm.xlu0 %962, %v1188_v63   ;;  %v1332_v63 = vpop.permute.xlu1 %741 }
 0x101   : > { %vm766_vm15 = vcmp.eq.s32.totalorder %v1332_v63, 1 }
 0x104   : > { %750 = vperm.xlu0 %962, %v1191_v0   ;;  %v1334_v0 = vpop.permute.xlu0 %732  ;;  %v1336_v38 = vpop.permute.xlu1 %747 }
 0x105   : > { %vm763_vm14 = vcmp.eq.s32.totalorder %v1334_v0, 1  ;;  %vm768_vm9 = vcmp.eq.s32.totalorder %v1336_v38, 1 }
 0x16f   : > { %v615_v39 = vpop.xlane.xlu0 %614 }
 0x170   : > { %v616_v40 = vmul.f32 0.03125, %v615_v39 }
 0x171   : > { %v619_v41 = vpop.xlane.xlu1 %618 }
 0x172   : > { %v621_v42 = vmul.f32 %v616_v40, %v616_v40  ;;  %v620_v45 = vmul.f32 0.03125, %v619_v41 }
 0x174   : > { %v622_v46 = vsub.f32 %v620_v45, %v621_v42 }
 0x175   : > { %v754_v54 = vpop.permute.xlu1 %753 }
 0x176   : > { %v623_v49 = vmax.f32 %v622_v46, 0.0  ;;  %vm770_vm1 = vcmp.eq.s32.totalorder %v754_v54, 1 }
 0x177   : > { %v739_v51 = vpop.permute.xlu0 %738 }
 0x178   : > { %v626_v50 = vadd.f32 1e-05, %v623_v49  ;;  %vm765_vm2 = vcmp.eq.s32.totalorder %v739_v51, 1 }
 0x17a   : > { %964 = vrsqrt.f32 %v626_v50 }
 0x17b   : > { %v745_v52 = vpop.permute.xlu0 %744 }
 0x17c   : > { %vm767_vm3 = vcmp.eq.s32.totalorder %v745_v52, 1 }
 0x17f   : > { %v751_v55 = vpop.permute.xlu0 %750 }
 0x180   : > { %vm769_vm4 = vcmp.eq.s32.totalorder %v751_v55, 1 }
 0x187   : > { %v965_v56 = vpop.eup %964 }
 0x188   : > { %v634_v57 = vmul.f32 %v965_v56, %v913_v53 }
 0x18a   : > { %v635_v59 = vmul.f32 %v634_v57, %v616_v40  ;;  %v658_v61 = vmul.f32 %v634_v57, %v1286_v43  ;;  %v653_v2 = vmul.f32 %v634_v57, %v1261_v8  ;;  %v655_v4 = vmul.f32 %v634_v57, %v1275_v26 }
 0x18b   : > { %v657_v9 = vmul.f32 %v634_v57, %v1289_v44  ;;  %v643_v10 = vmul.f32 %v634_v57, %v1197_v1  ;;  %v644_v11 = vmul.f32 %v634_v57, %v1207_v7  ;;  %v645_v43 = vmul.f32 %v634_v57, %v1200_v3 }
 0x18c   : > { %v642_v8 = vsub.f32 %v914_v58, %v635_v59  ;;  %v646_v26 = vmul.f32 %v634_v57, %v1204_v6  ;;  %v647_v12 = vmul.f32 %v634_v57, %v1217_v15  ;;  %v648_v44 = vmul.f32 %v634_v57, %v1214_v14 }
 0x18d   : > { %v649_v1 = vmul.f32 %v634_v57, %v1233_v32  ;;  %v650_v3 = vmul.f32 %v634_v57, %v1230_v31  ;;  %v651_v7 = vmul.f32 %v634_v57, %v1247_v48  ;;  %v652_v13 = vmul.f32 %v634_v57, %v1244_v47 }
 0x18e   : > { %v674_v16 = vadd.f32 %v658_v61, %v642_v8  ;;  %v669_v6 = vadd.f32 %v653_v2, %v642_v8  ;;  %v671_v17 = vadd.f32 %v655_v4, %v642_v8  ;;  %v673_v15 = vadd.f32 %v657_v9, %v642_v8 }
 0x18f   : > { %v654_v14 = vmul.f32 %v634_v57, %v1258_v5  ;;  %v656_v18 = vmul.f32 %v634_v57, %v1272_v25  ;;  %v659_v19 = vadd.f32 %v643_v10, %v642_v8  ;;  %v660_v20 = vadd.f32 %v644_v11, %v642_v8 }
 0x190   : > { %v786_v32 = vsel %vm770_vm1, %v674_v16, 0.0  ;;  %v781_v21 = vsel %vm765_vm2, %v669_v6, 0.0  ;;  %v783_v31 = vsel %vm767_vm3, %v671_v17, 0.0  ;;  %v785_v48 = vsel %vm769_vm4, %v673_v15, 0.0 }
 0x191   : > { %802 = vst.msk [vmem:[%s1379_s8 + $0x78] sm:$0xff] %vm534_vm0, %v786_v32  ;;  %797 = vst.msk [vmem:[%s1379_s8 + $0x50] sm:$0xff] %vm534_vm0, %v781_v21  ;;  %v661_v47 = vadd.f32 %v645_v43, %v642_v8  ;;  %v662_v5 = vadd.f32 %v646_v26, %v642_v8  ;;  %v663_v25 = vadd.f32 %v647_v12, %v642_v8  ;;  %v771_v41 = vsel %vm755_vm6, %v659_v19, 0.0 }
 0x192   : > { %799 = vst.msk [vmem:[%s1379_s8 + $0x60] sm:$0xff] %vm534_vm0, %v783_v31  ;;  %801 = vst.msk [vmem:[%s1379_s8 + $0x70] sm:$0xff] %vm534_vm0, %v785_v48  ;;  %v664_v22 = vadd.f32 %v648_v44, %v642_v8  ;;  %v665_v23 = vadd.f32 %v649_v1, %v642_v8  ;;  %v666_v24 = vadd.f32 %v650_v3, %v642_v8  ;;  %v772_v42 = vsel %vm756_vm5, %v660_v20, 0.0 }
 0x193   : > { %v667_v27 = vadd.f32 %v651_v7, %v642_v8  ;;  %v668_v28 = vadd.f32 %v652_v13, %v642_v8  ;;  %v670_v39 = vadd.f32 %v654_v14, %v642_v8  ;;  %v672_v40 = vadd.f32 %v656_v18, %v642_v8  ;;  %787 = vst.msk [vmem:[%s1379_s8] sm:$0xff] %vm534_vm0, %v771_v41 }
 0x194   : > { %v773_v45 = vsel %vm757_vm8, %v661_v47, 0.0  ;;  %v774_v46 = vsel %vm758_vm7, %v662_v5, 0.0  ;;  %v775_v33 = vsel %vm759_vm10, %v663_v25, 0.0  ;;  %vm1495_vm1 = vcmp.eq.s32.totalorder %v1320_v34, 1  ;;  %788 = vst.msk [vmem:[%s1379_s8 + $0x8] sm:$0xff] %vm534_vm0, %v772_v42 }
 0x195   : > { %v776_v29 = vsel %vm1495_vm1, %v664_v22, 0.0  ;;  %v777_v30 = vsel %vm761_vm12, %v665_v23, 0.0  ;;  %v778_v35 = vsel %vm762_vm11, %v666_v24, 0.0  ;;  %v779_v34 = vsel %vm763_vm14, %v667_v27, 0.0  ;;  %789 = vst.msk [vmem:[%s1379_s8 + $0x10] sm:$0xff] %vm534_vm0, %v773_v45  ;;  %790 = vst.msk [vmem:[%s1379_s8 + $0x18] sm:$0xff] %vm534_vm0, %v774_v46 }
 0x196   : > { %v780_v37 = vsel %vm764_vm13, %v668_v28, 0.0  ;;  %791 = vst.msk [vmem:[%s1379_s8 + $0x20] sm:$0xff] %vm534_vm0, %v775_v33  ;;  %792 = vst.msk [vmem:[%s1379_s8 + $0x28] sm:$0xff] %vm534_vm0, %v776_v29  ;;  %v782_v36 = vsel %vm766_vm15, %v670_v39, 0.0  ;;  %v784_v62 = vsel %vm768_vm9, %v672_v40, 0.0 }
 0x197   : > { %793 = vst.msk [vmem:[%s1379_s8 + $0x30] sm:$0xff] %vm534_vm0, %v777_v30  ;;  %794 = vst.msk [vmem:[%s1379_s8 + $0x38] sm:$0xff] %vm534_vm0, %v778_v35 }
 0x198   : > { %795 = vst.msk [vmem:[%s1379_s8 + $0x40] sm:$0xff] %vm534_vm0, %v779_v34  ;;  %796 = vst.msk [vmem:[%s1379_s8 + $0x48] sm:$0xff] %vm534_vm0, %v780_v37 }
 0x199   : > { %798 = vst.msk [vmem:[%s1379_s8 + $0x58] sm:$0xff] %vm534_vm0, %v782_v36  ;;  %800 = vst.msk [vmem:[%s1379_s8 + $0x68] sm:$0xff] %vm534_vm0, %v784_v62 }
 0x19a   : > { %979 = shalt.err (!%p976_p5)
}
 0x19b   : > { %s980_s22 = scalar_lea.hbm %s1397_s11, 2048  ;;  %s984_s29 = scalar_lea.hbm %s1491_s4, 8192 }
 0x19c   : > { %p981_p7 = scmp.ne.s32.totalorder %s1397_s11, %s980_s22  ;;  %p985_p11 = scmp.lt.s32.totalorder %s1397_s11, %s1491_s4 }
 0x19d   : > { %p986_p12 = scmp.lt.s32.totalorder %s984_s29, %s980_s22 }
 0x19e   : > { %p982_p9 = pnand %p981_p7, %p1100_p6 }
 0x19f   : > { %p987_p13 = por %p986_p12, %p985_p11 }
 0x1a0   : > { %p983_p10 = pneg %p982_p9 }
 0x1a2   : > { %p988_p0 = pnand %p987_p13, %p983_p10 }
 0x1a4   : > { %991 = shalt.err (!%p988_p0)
}
 0x1a5   : > { %s1030_s6 = smov 128   ;;  %s1031_s7 = smov 512  }
 0x1a6   : > { %s1032_s8 = smov 8  }
 0x1a7   : > { %919 = dma.vmem_to_hbm [thread:$0]  (%p1100_p6), %s1411_s19, 2048, %s1397_s11, %s1447_s12, %s1030_s6, %s1031_s7, %s1032_s8  }
 0x1a8 PF: > { %p925_p1 = scmp.ge.s32.totalorder %s1026_s18, 2  ;;  %s831_s9 = sand.u32 1, %s1014_s15  }
 0x1a9   : > { %s832_s10 = scalar_lea.sflag [#allocation5], %s831_s9 }
 0x1aa   : > { %p922_p2 = pnand %p925_p1, %p1104_p8 }
 0x1ac   : > { %p923_p3 = pneg %p922_p2 }
 0x1ae   : > { %1009 = dma.done.wait (%p923_p3), %s832_s10, 2048  }
 0x1af   : > { %1011 = vsyncadd (%p923_p3), %s832_s10, 4294965248  ;;  %p14_p4 = scmp.ge.s32.totalorder %s1081_s21, 6   ;;  %s1496_s15 = smov %s1018_s16 }
 0x1b0   : > { %s1497_s16 = smov %s1022_s17  ;;  %s1498_s17 = smov %s1094_s24 }
 0x1b1   : > { %s1499_s18 = smov %s1081_s21  ;;  %16 = sbr.rel (!%p14_p4) target bundleno = 3 (0x3), region = 160 }
 0x1b6   :  { %837 = vsyncpa [#allocation5], 1 }
 0x1b7   :  { %839 = vsyncpa [#allocation5 + $0x1], 1 }

</bundles_post_ra>
